<compile_context>
chip_gen: v5e
topology: v5e:2x2
jax: 0.10.0
libtpu: 0.0.40
codegen_flags: <defaults>
</compile_context>

<pallas_src>
import math

import jax
import jax.numpy as jnp
from jax.experimental import pallas as pl
from jax.experimental.pallas import tpu as pltpu

_LANE = 128


def _round_up(a, m):
    return -(-a // m) * m


def _sinusoidal_kernel(x_ref, w_ref, o_ref):
    # x_ref: (1, TB) f32        -- timesteps, batch along lanes (lane-dense)
    # w_ref: (hd_pad, 1) f32    -- 2*pi*weights (pre-scaled in wrapper), sublanes
    # o_ref: (8 + 2*hd_pad, TB) f32 -- [x pad-block ; sin ; cos], lane-dense
    hd = w_ref.shape[0]
    tb = x_ref.shape[1]
    x = x_ref[...]                                   # (1, TB)
    freqs = w_ref[...] * x                           # (hd, TB): single VPU broadcast-mul
    # Passthrough: fill the 8-row pad block with x (full aligned store; only
    # row 7 survives the wrapper's contiguous slice).
    o_ref[0:8, :] = jnp.broadcast_to(x, (8, tb)).astype(o_ref.dtype)
    # sin / cos at sublane-aligned offsets (8 and 8+hd_pad are multiples of 8).
    o_ref[8:8 + hd, :] = jnp.sin(freqs).astype(o_ref.dtype)
    o_ref[8 + hd:, :] = jnp.cos(freqs).astype(o_ref.dtype)


def learned_sinusoidal_pos_emb(x, weights, *, block_b=8192):
    """x: (B,) float timesteps; weights: (half_dim,) learned frequencies.

    Returns (B, 1 + 2*half_dim) float32 = [x | sin(2*pi*x*w) | cos(2*pi*x*w)],
    identical semantics to the PyTorch module's forward.
    """
    assert x.ndim == 1
    assert weights.ndim == 1
    b = x.shape[0]
    half_dim = weights.shape[0]
    hd_pad = _round_up(half_dim, 8)          # sublane-align the cos block
    rows = 8 + 2 * hd_pad

    x_f32 = x.astype(jnp.float32)
    # Fold 2*pi into the tiny weights vector here so the kernel's VALU path is
    # one broadcast multiply (sin/cos polynomials dominate the VALU budget).
    w2pi = weights.astype(jnp.float32) * (2.0 * math.pi)
    w2pi = jnp.pad(w2pi, (0, hd_pad - half_dim)).reshape(hd_pad, 1)

    # ---- tile sizing ----
    # Cap output block at ~4 MiB: big enough to hide per-step overhead, small
    # enough that double-buffered VMEM is trivial even on v7x (64 MiB VMEM).
    tb_vmem_cap = max(_LANE, ((4 << 20) // (rows * 4)) // _LANE * _LANE)
    tile_cap = max(_LANE, min(block_b, tb_vmem_cap))

    b_lane = max(_LANE, _round_up(b, _LANE))
    if b_lane <= tile_cap:
        if b_lane >= 2 * _LANE:
            # Split into 2 tiles so the "parallel" axis can use both v7x TCs.
            tb = _round_up(-(-b_lane // 2), _LANE)
            b_pad = 2 * tb
        else:
            tb = b_lane
            b_pad = b_lane
    else:
        tb = tile_cap
        b_pad = _round_up(b_lane, tb)
    num_tiles = b_pad // tb

    x_lane = jnp.pad(x_f32, (0, b_pad - b)).reshape(1, b_pad)   # (1, B_pad)

    out_t = pl.pallas_call(
        _sinusoidal_kernel,
        out_shape=jax.ShapeDtypeStruct((rows, b_pad), jnp.float32),
        grid=(num_tiles,),
        in_specs=[
            pl.BlockSpec((1, tb), lambda i: (0, i)),          # x: lane-dense tile
            pl.BlockSpec((hd_pad, 1), lambda i: (0, 0)),      # w2pi: tiny, reused
        ],
        out_specs=pl.BlockSpec((rows, tb), lambda i: (0, i)),
        compiler_params=pltpu.CompilerParams(
            dimension_semantics=("parallel",),                # v7x: shard batch over 2 TCs
        ),
    )(x_lane, w2pi)

    if hd_pad == half_dim:
        # Common case: row 7 = x, rows 8..8+half_dim = sin, then cos, all
        # contiguous -> one fused slice+transpose pass, no concat.
        return out_t[7:8 + 2 * half_dim, :b].T
    # Rare case (half_dim not a multiple of 8): assemble the real rows.
    x_row = out_t[7:8, :b]
    sin_rows = out_t[8:8 + half_dim, :b]
    cos_rows = out_t[8 + hd_pad:8 + hd_pad + half_dim, :b]
    return jnp.concatenate([x_row, sin_rows, cos_rows], axis=0).T


if __name__ == "__main__":
    key = jax.random.PRNGKey(0)
    k_x, k_w = jax.random.split(key)

    dim = 32                      # module arg; must be even
    half_dim = dim // 2
    batch = 8

    # Deterministic "learned" parameter (torch.randn equivalent) and inputs.
    weights = jax.random.normal(k_w, (half_dim,), dtype=jnp.float32)
    x = jax.random.normal(k_x, (batch,), dtype=jnp.float32)

    out = learned_sinusoidal_pos_emb(x, weights)
    out = jax.block_until_ready(out)

    # Reference check in plain JAX (same math as the PyTorch forward).
    freqs = x[:, None] * weights[None, :] * 2.0 * math.pi
    ref = jnp.concatenate([x[:, None], jnp.sin(freqs), jnp.cos(freqs)], axis=-1)
    assert out.shape == (batch, 1 + dim)
    assert jnp.allclose(out, ref, atol=1e-5, rtol=1e-5)

    print("KERNEL_OK")
</pallas_src>

<mosaic_0001>
module attributes {stable_mosaic.version = 11 : i64} {
  func.func @_sinusoidal_kernel(%arg0: i32, %arg1: memref<1x128xf32, #tpu.memory_space<vmem>>, %arg2: memref<16x1xf32, #tpu.memory_space<vmem>>, %arg3: memref<40x128xf32, #tpu.memory_space<vmem>>) attributes {dimension_semantics = [#tpu.dimension_semantics<parallel>], iteration_bounds = array<i64: 1>, scalar_prefetch = 0 : i64, scratch_operands = 0 : i64, tpu.core_type = #tpu.core_type<tc>, window_params = [{transform_indices = @transform_0, window_bounds = array<i64: 1, 128>}, {pipeline_mode = #tpu.pipeline_mode<synchronous>, transform_indices = @transform_1, window_bounds = array<i64: 16, 1>}, {transform_indices = @transform_2, window_bounds = array<i64: 40, 128>}]} {
    %c0 = arith.constant 0 : index
    %c0_0 = arith.constant 0 : index
    %0 = vector.load %arg1[%c0, %c0_0] : memref<1x128xf32, #tpu.memory_space<vmem>>, vector<1x128xf32>
    %c0_1 = arith.constant 0 : index
    %c0_2 = arith.constant 0 : index
    %1 = vector.load %arg2[%c0_1, %c0_2] : memref<16x1xf32, #tpu.memory_space<vmem>>, vector<16x1xf32>
    %2 = vector.broadcast %1 : vector<16x1xf32> to vector<16x128xf32>
    %3 = vector.broadcast %0 : vector<1x128xf32> to vector<16x128xf32>
    %4 = arith.mulf %2, %3 : vector<16x128xf32>
    %5 = vector.shape_cast %0 : vector<1x128xf32> to vector<1x128xf32>
    %6 = vector.broadcast %5 : vector<1x128xf32> to vector<8x128xf32>
    %c0_3 = arith.constant 0 : index
    %c0_4 = arith.constant 0 : index
    %7 = vector.load %arg3[%c0_3, %c0_4] : memref<40x128xf32, #tpu.memory_space<vmem>>, vector<8x128xf32>
    tpu.vector_store %arg3[%c0_3, %c0_4], %6 {strides = array<i32>} : memref<40x128xf32, #tpu.memory_space<vmem>>, vector<8x128xf32>,
    %8 = math.sin %4 : vector<16x128xf32>
    %c8 = arith.constant 8 : index
    %c0_5 = arith.constant 0 : index
    %9 = vector.load %arg3[%c8, %c0_5] : memref<40x128xf32, #tpu.memory_space<vmem>>, vector<16x128xf32>
    tpu.vector_store %arg3[%c8, %c0_5], %8 {strides = array<i32>} : memref<40x128xf32, #tpu.memory_space<vmem>>, vector<16x128xf32>,
    %10 = math.cos %4 : vector<16x128xf32>
    %c24 = arith.constant 24 : index
    %c0_6 = arith.constant 0 : index
    %11 = vector.load %arg3[%c24, %c0_6] : memref<40x128xf32, #tpu.memory_space<vmem>>, vector<16x128xf32>
    tpu.vector_store %arg3[%c24, %c0_6], %10 {strides = array<i32>} : memref<40x128xf32, #tpu.memory_space<vmem>>, vector<16x128xf32>,
    return
  }
  func.func @transform_0(%arg0: i32) -> (i32, i32) {
    %c0_i32 = arith.constant 0 : i32
    %c0_i32_0 = arith.constant 0 : i32
    return %c0_i32, %arg0 : i32, i32
  }
  func.func @transform_1(%arg0: i32) -> (i32, i32) {
    %c0_i32 = arith.constant 0 : i32
    %c0_i32_0 = arith.constant 0 : i32
    %c0_i32_1 = arith.constant 0 : i32
    return %c0_i32, %c0_i32_0 : i32, i32
  }
  func.func @transform_2(%arg0: i32) -> (i32, i32) {
    %c0_i32 = arith.constant 0 : i32
    %c0_i32_0 = arith.constant 0 : i32
    return %c0_i32, %arg0 : i32, i32
  }
}

</mosaic_0001>

<bundles_post_ra>
// kernel: tpu_custom_call.1
= control target key start
LH: loop header
LB: loop body
LE: loop exit
PB: predicated region body
PF: predicated region fallthrough
CT: control target
= control target key end

     0   :  { %v721_v1 = vmov 0   ;;  %s898_s0 = inlined_call_operand.vmem [shape: f32[1,128], index: 0, kind: input, shape index: {}]   ;;  %s899_s1 = inlined_call_operand.vmem [shape: f32[16,1], index: 1, kind: input, shape index: {}]   ;;  %s900_s2 = inlined_call_operand.hbm [shape: f32[40,128], index: 2, kind: output, shape index: {}]  }
   0x1   :  { %v13_v0 = vld [vmem:[%s899_s1] sm:$0xff]  ;;  %693 = vset.pattern.permute.xlu0 %v721_v1 }
   0x2   :  { %17 = vperm.xlu0 %693, %v13_v0  }
   0x3   :  { %7 = vsyncpa [#allocation3], 0  ;;  %v14_v2 = vld [vmem:[%s899_s1 + $0x8] sm:$0xff]  ;;  %v694_v3 = vld [vmem:[%s898_s0] ss:$0 sm:$0xff]  ;;  %s728_s0 = smov [#allocation2]  }
   0x4   :  { %30 = vst [vmem:[#allocation2] sm:$0xff] %v694_v3  ;;  %v722_v25 = vmov 683565275   ;;  %v723_v27 = vmov 2475754826   ;;  %s657_s1 = sshll.u32 %s728_s0, 4  ;;  %s658_s1 = int_to_ptr.vmem [resolvable:$true] %s657_s1 }
   0x5   :  { %v724_v31 = vmov 2131351028   ;;  %v725_v34 = vmov 2102212464   ;;  %v726_v37 = vmov 920167782  }
   0x6   :  { %v727_v40 = vmov 1326507024   ;;  %s659_s17 = sshll.u32 %s900_s2, 4  ;;  %s729_s18 = smov 128   ;;  %s660_s17 = int_to_ptr.hbm [resolvable:$true] %s659_s17 }
   0x7   :  { %s730_s2 = smov 8  }
   0xa   :  { %22 = vperm.xlu0 %693, %v14_v2  }
  0x74   :  { %v18_v4 = vpop.permute.xlu0 %17 }
  0x75   :  { %v756_v5 = vmul.f32 %v694_v3, %v18_v4 }
  0x77   :  { %v31_v6 = vand.u32 2147483647, %v756_v5  ;;  %v34_v7 = vand.u32 2139095040, %v756_v5 }
  0x79   :  { %v35_v8 = vshrl.u32 %v34_v7, 23  ;;  %v38_v9 = vand.u32 8388607, %v31_v6 }
  0x7b   :  { %v671_v10 = vadd.s32 4294967169, %v35_v8  ;;  %v39_v11 = vor.u32 8388608, %v38_v9 }
  0x7c   :  { %v23_v12 = vpop.permute.xlu0 %22 }
  0x7d   :  { %v41_v13 = vadd.s32 1, %v671_v10  ;;  %v762_v14 = vmul.f32 %v694_v3, %v23_v12  ;;  %v764_v15 = vshll.u32 %v39_v11, 8 }
  0x7f   :  { %vm42_vm0 = vcmp.gt.s32.totalorder %v41_v13, 0  ;;  %v186_v17 = vand.u32 2147483647, %v762_v14  ;;  %v189_v18 = vand.u32 2139095040, %v762_v14  ;;  %v80_v21 = vand.u32 65535, %v764_v15 }
  0x80   :  { %v43_v16 = vsel %vm42_vm0, %v41_v13, 0  ;;  %v81_v22 = vshrl.u32 %v764_v15, 16 }
  0x81   :  { %v45_v19 = vand.u32 31, %v43_v16  ;;  %v190_v23 = vshrl.u32 %v189_v18, 23  ;;  %v44_v24 = vshrl.u32 %v43_v16, 5  ;;  %v774_v29 = vand.u32 8388607, %v186_v17 }
  0x83   :  { %v46_v20 = vsub.s32 32, %v45_v19  ;;  %v48_v26 = vshll.u32 %v722_v25, %v45_v19  ;;  %v51_v28 = vshll.u32 %v723_v27, %v45_v19  ;;  %v54_v33 = vshll.u32 %v724_v31, %v45_v19 }
  0x84   :  { %v57_v36 = vshll.u32 %v725_v34, %v45_v19  ;;  %v60_v39 = vshll.u32 %v726_v37, %v45_v19  ;;  %v674_v45 = vadd.s32 4294967169, %v190_v23  ;;  %vm63_vm1 = vcmp.lt.s32.totalorder %v44_v24, 1 }
  0x85   :  { %v49_v30 = vshrl.u32 %v723_v27, %v46_v20  ;;  %v52_v32 = vshrl.u32 %v724_v31, %v46_v20  ;;  %v55_v35 = vshrl.u32 %v725_v34, %v46_v20  ;;  %v58_v38 = vshrl.u32 %v726_v37, %v46_v20 }
  0x86   :  { %v61_v41 = vshrl.u32 %v727_v40, %v46_v20  ;;  %vm66_vm2 = vcmp.lt.s32.totalorder %v44_v24, 4  ;;  %v47_v48 = vshrl.u32 %v722_v25, %v46_v20  ;;  %vm65_vm3 = vcmp.lt.s32.totalorder %v44_v24, 3 }
  0x87   :  { %v50_v42 = vor.u32 %v49_v30, %v48_v26  ;;  %v53_v43 = vor.u32 %v52_v32, %v51_v28  ;;  %v56_v44 = vor.u32 %v55_v35, %v54_v33  ;;  %v59_v46 = vor.u32 %v58_v38, %v57_v36 }
  0x88   :  { %v62_v47 = vor.u32 %v61_v41, %v60_v39  ;;  %v196_v54 = vadd.s32 1, %v674_v45  ;;  %vm64_vm4 = vcmp.lt.s32.totalorder %v44_v24, 2  ;;  %v194_v2 = vor.u32 8388608, %v774_v29 }
  0x89   :  { %v68_v49 = vsel %vm66_vm2, %v56_v44, 2102212464  ;;  %v71_v50 = vsel %vm63_vm1, %v50_v42, %v53_v43  ;;  %v75_v51 = vsel %vm63_vm1, %v53_v43, %v56_v44  ;;  %v72_v52 = vsel %vm66_vm2, %v59_v46, 920167782 }
  0x8a   :  { %v76_v53 = vsel %vm66_vm2, %v62_v47, 1326507024  ;;  %v67_v55 = vsel %vm63_vm1, %v47_v48, %v50_v42  ;;  %v73_v56 = vsel %vm65_vm3, %v56_v44, %v72_v52  ;;  %v69_v58 = vsel %vm65_vm3, %v53_v43, %v68_v49 }
  0x8b   :  { %v77_v57 = vsel %vm65_vm3, %v59_v46, %v76_v53  ;;  %v74_v59 = vsel %vm64_vm4, %v71_v50, %v73_v56  ;;  %vm197_vm5 = vcmp.gt.s32.totalorder %v196_v54, 0  ;;  %v786_v3 = vsel %vm64_vm4, %v67_v55, %v69_v58 }
  0x8c   :  { %v78_v60 = vsel %vm64_vm4, %v75_v51, %v77_v57  ;;  %v104_v63 = vand.u32 65535, %v74_v59  ;;  %v105_v0 = vshrl.u32 %v74_v59, 16  ;;  %v198_v8 = vsel %vm197_vm5, %v196_v54, 0 }
  0x8d   :  { %v82_v61 = vand.u32 65535, %v78_v60  ;;  %v83_v62 = vshrl.u32 %v78_v60, 16  ;;  %v200_v30 = vand.u32 31, %v198_v8  ;;  %v793_v41 = vshrl.u32 %v198_v8, 5 }
  0x8e   :  { %v107_v11 = vmul.u32 %v105_v0, %v80_v21  ;;  %v108_v12 = vmul.u32 %v104_v63, %v81_v22  ;;  %v106_v18 = vmul.u32 %v104_v63, %v80_v21  ;;  %v109_v19 = vmul.u32 %v105_v0, %v81_v22 }
  0x8f   :  { %v85_v4 = vmul.u32 %v83_v62, %v80_v21  ;;  %v86_v7 = vmul.u32 %v82_v61, %v81_v22  ;;  %v84_v9 = vmul.u32 %v82_v61, %v80_v21  ;;  %v87_v10 = vmul.u32 %v83_v62, %v81_v22 }
  0x90   :  { %v110_v24 = vshll.u32 %v107_v11, 16  ;;  %v111_v26 = vshrl.u32 %v107_v11, 16  ;;  %v112_v29 = vshll.u32 %v108_v12, 16  ;;  %v113_v33 = vshrl.u32 %v108_v12, 16 }
  0x91   :  { %v88_v13 = vshll.u32 %v85_v4, 16  ;;  %v89_v16 = vshrl.u32 %v85_v4, 16  ;;  %v90_v20 = vshll.u32 %v86_v7, 16  ;;  %v91_v23 = vshrl.u32 %v86_v7, 16 }
  0x92   :  { %vm114_vm7 = vc.u32 %v106_v18, %v110_v24  ;;  %v116_v35 = vadd.s32 %v110_v24, %v106_v18  ;;  %v790_v39 = vsub.s32 32, %v200_v30  ;;  %v203_v45 = vshll.u32 %v722_v25, %v200_v30 }
  0x93   :  { %vm92_vm6 = vc.u32 %v84_v9, %v88_v13  ;;  %v94_v28 = vadd.s32 %v88_v13, %v84_v9  ;;  %v115_v38 = vsel %vm114_vm7, 1, %v721_v1  ;;  %v206_v48 = vshll.u32 %v723_v27, %v200_v30 }
  0x94   :  { %v93_v32 = vsel %vm92_vm6, 1, %v721_v1  ;;  %v117_v22 = vadd.s32 %v115_v38, %v109_v19  ;;  %vm118_vm9 = vc.u32 %v116_v35, %v112_v29  ;;  %v796_v44 = vadd.s32 %v116_v35, %v112_v29 }
  0x95   :  { %v95_v36 = vadd.s32 %v93_v32, %v87_v10  ;;  %vm96_vm8 = vc.u32 %v94_v28, %v90_v20  ;;  %v119_v43 = vsel %vm118_vm9, 1, %v721_v1  ;;  %v204_v47 = vshrl.u32 %v723_v27, %v790_v39 }
  0x96   :  { %v97_v21 = vsel %vm96_vm8, 1, %v721_v1  ;;  %v121_v46 = vadd.s32 %v119_v43, %v117_v22  ;;  %v207_v49 = vshrl.u32 %v724_v31, %v790_v39  ;;  %v209_v51 = vshll.u32 %v724_v31, %v200_v30 }
  0x97   :  { %v99_v42 = vadd.s32 %v97_v21, %v95_v36  ;;  %v210_v52 = vshrl.u32 %v725_v34, %v790_v39  ;;  %v212_v53 = vshll.u32 %v725_v34, %v200_v30  ;;  %v808_v55 = vor.u32 %v204_v47, %v203_v45 }
  0x98   :  { %v122_v54 = vadd.s32 %v121_v46, %v111_v26  ;;  %v810_v56 = vor.u32 %v207_v49, %v206_v48  ;;  %v213_v57 = vshrl.u32 %v726_v37, %v790_v39  ;;  %v215_v59 = vshll.u32 %v726_v37, %v200_v30 }
  0x99   :  { %v100_v50 = vadd.s32 %v99_v42, %v89_v16  ;;  %v816_v58 = vor.u32 %v210_v52, %v209_v51  ;;  %v216_v31 = vshrl.u32 %v727_v40, %v790_v39  ;;  %vm218_vm11 = vcmp.lt.s32.totalorder %v793_v41, 1 }
  0x9a   :  { %v123_v60 = vadd.s32 %v122_v54, %v113_v33  ;;  %v214_v61 = vor.u32 %v213_v57, %v212_v53  ;;  %v824_v62 = vshll.u32 %v194_v2, 8  ;;  %v124_v63 = vmul.u32 %v764_v15, %v786_v3 }
  0x9b   :  { %v814_v27 = vadd.s32 %v100_v50, %v91_v23  ;;  %v217_v34 = vor.u32 %v216_v31, %v215_v59  ;;  %vm221_vm12 = vcmp.lt.s32.totalorder %v793_v41, 4  ;;  %v226_v37 = vsel %vm218_vm11, %v808_v55, %v810_v56 }
  0x9c   :  { %v127_v0 = vadd.s32 1, %v123_v60  ;;  %vm220_vm13 = vcmp.lt.s32.totalorder %v793_v41, 3  ;;  %v227_v40 = vsel %vm221_vm12, %v214_v61, 920167782  ;;  %v230_v2 = vsel %vm218_vm11, %v810_v56, %v816_v58 }
  0x9d   :  { %vm126_vm10 = vc.u32 %v814_v27, %v796_v44  ;;  %v231_v15 = vsel %vm221_vm12, %v217_v34, 1326507024  ;;  %vm219_vm14 = vcmp.lt.s32.totalorder %v793_v41, 2  ;;  %v228_v4 = vsel %vm220_vm13, %v816_v58, %v227_v40 }
  0x9e   :  { %v128_v3 = vsel %vm126_vm10, %v127_v0, %v123_v60  ;;  %v232_v7 = vsel %vm220_vm13, %v214_v61, %v231_v15  ;;  %v229_v9 = vsel %vm219_vm14, %v226_v37, %v228_v4  ;;  %v235_v11 = vand.u32 65535, %v824_v62 }
  0x9f   :  { %v129_v8 = vadd.s32 %v128_v3, %v124_v63  ;;  %v233_v10 = vsel %vm219_vm14, %v230_v2, %v232_v7  ;;  %v236_v12 = vshrl.u32 %v824_v62, 16  ;;  %v260_v18 = vshrl.u32 %v229_v9, 16 }
  0xa0   :  { %v237_v13 = vand.u32 65535, %v233_v10  ;;  %v238_v16 = vshrl.u32 %v233_v10, 16  ;;  %v259_v24 = vand.u32 65535, %v229_v9  ;;  %v202_v31 = vshrl.u32 %v722_v25, %v790_v39 }
  0xa1   :  { %v130_v19 = vadd.s32 536870912, %v129_v8  ;;  %v262_v28 = vmul.u32 %v260_v18, %v235_v11  ;;  %v264_v48 = vmul.u32 %v260_v18, %v236_v12  ;;  %v223_v60 = vsel %vm221_vm12, %v816_v58, 2102212464 }
  0xa2   :  { %v240_v20 = vmul.u32 %v238_v16, %v235_v11  ;;  %v241_v23 = vmul.u32 %v237_v13, %v236_v12  ;;  %v239_v29 = vmul.u32 %v237_v13, %v235_v11  ;;  %v242_v33 = vmul.u32 %v238_v16, %v236_v12 }
  0xa3   :  { %v854_v26 = vshrl.u32 %v130_v19, 30  ;;  %v265_v35 = vshll.u32 %v262_v28, 16  ;;  %v261_v21 = vmul.u32 %v259_v24, %v235_v11  ;;  %v263_v43 = vmul.u32 %v259_v24, %v236_v12 }
  0xa4   :  { %v243_v30 = vshll.u32 %v240_v20, 16  ;;  %v245_v36 = vshll.u32 %v241_v23, 16  ;;  %v244_v54 = vshrl.u32 %v240_v20, 16  ;;  %v246_v34 = vshrl.u32 %v241_v23, 16 }
  0xa5   :  { %v132_v32 = vshll.u32 %v854_v26, 30  ;;  %vm269_vm1 = vc.u32 %v261_v21, %v265_v35  ;;  %v271_v50 = vadd.s32 %v265_v35, %v261_v21  ;;  %v267_v52 = vshll.u32 %v263_v43, 16 }
  0xa6   :  { %vm247_vm15 = vc.u32 %v239_v29, %v243_v30  ;;  %v249_v38 = vadd.s32 %v243_v30, %v239_v29  ;;  %v270_v49 = vsel %vm269_vm1, 1, %v721_v1  ;;  %v266_v37 = vshrl.u32 %v262_v28, 16 }
  0xa7   :  { %v133_v22 = vsub.s32 %v129_v8, %v132_v32  ;;  %v248_v42 = vsel %vm247_vm15, 1, %v721_v1  ;;  %v272_v59 = vadd.s32 %v270_v49, %v264_v48  ;;  %vm273_vm3 = vc.u32 %v271_v50, %v267_v52 }
  0xa8   :  { %v250_v45 = vadd.s32 %v248_v42, %v242_v33  ;;  %vm251_vm0 = vc.u32 %v249_v38, %v245_v36  ;;  %v274_v0 = vsel %vm273_vm3, 1, %v721_v1  ;;  %v222_v2 = vsel %vm218_vm11, %v202_v31, %v808_v55 }
  0xa9   :  { %vm134_vm2 = vcmp.lt.s32.totalorder %v133_v22, 0  ;;  %v135_v46 = vsub.s32 0, %v133_v22  ;;  %v252_v47 = vsel %vm251_vm0, 1, %v721_v1  ;;  %v276_v40 = vadd.s32 %v274_v0, %v272_v59 }
  0xaa   :  { %v254_v57 = vadd.s32 %v252_v47, %v250_v45  ;;  %v224_v25 = vsel %vm220_vm13, %v810_v56, %v223_v60  ;;  %v268_v58 = vshrl.u32 %v263_v43, 16  ;;  %v125_v4 = vadd.s32 %v796_v44, %v814_v27 }
  0xab   :  { %v136_v51 = vsel %vm134_vm2, %v135_v46, %v133_v22  ;;  %v277_v3 = vadd.s32 %v276_v40, %v266_v37  ;;  %v275_v8 = vadd.s32 %v271_v50, %v267_v52  ;;  %v225_v9 = vsel %vm219_vm14, %v222_v2, %v224_v25 }
  0xac   :  { %v137_v53 = vclz %v136_v51  ;;  %v255_v63 = vadd.s32 %v254_v57, %v244_v54  ;;  %v279_v18 = vmul.u32 %v824_v62, %v225_v9  ;;  %vm33_vm6 = vcmp.lt.s32.totalorder %v756_v5, 0 }
  0xad   :  { %v278_v10 = vadd.s32 %v277_v3, %v268_v58  ;;  %vm32_vm7 = vcmp.le.f32.partialorder %v31_v6, 0.7853982  ;;  %v155_v62 = vsub.s32 4, %v854_v26  ;;  %vm174_vm0 = vweird.f32 %v756_v5 }
  0xae   :  { %v672_v61 = vadd.s32 4294967294, %v137_v53  ;;  %v256_v39 = vadd.s32 %v255_v63, %v246_v34  ;;  %vm188_vm1 = vcmp.lt.s32.totalorder %v762_v14, 0  ;;  %vm187_vm2 = vcmp.le.f32.partialorder %v186_v17, 0.7853982 }
  0xaf   :  { %v282_v13 = vadd.s32 1, %v278_v10  ;;  %v156_v21 = vsel %vm33_vm6, %v155_v62, %v854_v26 }
  0xb0   :  { %vm673_vm4 = vcmp.lt.s32.totalorder %v672_v61, 0  ;;  %vm281_vm5 = vc.u32 %v256_v39, %v275_v8  ;;  %v158_v48 = vsel %vm32_vm7, 0, %v156_v21  ;;  %v280_v57 = vadd.s32 %v275_v8, %v256_v39 }
  0xb1   :  { %v140_v15 = vsel %vm673_vm4, 0, %v672_v61  ;;  %v283_v19 = vsel %vm281_vm5, %v282_v13, %v278_v10  ;;  %v175_v53 = vadd.s32 3, %v158_v48  ;;  %v487_v61 = vand.u32 3, %v158_v48 }
  0xb2   :  { %v141_v7 = vsub.s32 32, %v140_v15  ;;  %v145_v1 = vsub.s32 4294967266, %v140_v15  ;;  %v142_v11 = vshll.u32 %v133_v22, %v140_v15  ;;  %v284_v23 = vadd.s32 %v283_v19, %v279_v18 }
  0xb3   :  { %v176_v2 = vand.u32 3, %v175_v53  ;;  %vm488_vm10 = vcmp.lt.s32.totalorder %v487_v61, 2  ;;  %vm489_vm12 = vcmp.eq.s32.totalorder %v487_v61, 0  ;;  %vm492_vm13 = vcmp.eq.s32.totalorder %v487_v61, 2 }
  0xb4   :  { %v143_v55 = vshrl.u32 %v125_v4, %v141_v7  ;;  %v146_v12 = vadd.s32 127, %v145_v1  ;;  %v285_v24 = vadd.s32 536870912, %v284_v23 }
  0xb5   :  { %vm177_vm11 = vcmp.lt.s32.totalorder %v176_v2, 2  ;;  %vm178_vm14 = vcmp.eq.s32.totalorder %v176_v2, 0  ;;  %vm181_vm15 = vcmp.eq.s32.totalorder %v176_v2, 2 }
  0xb6   :  { %v144_v56 = vor.u32 %v143_v55, %v142_v11  ;;  %v147_v16 = vshll.u32 %v146_v12, 23  ;;  %v877_v29 = vshrl.u32 %v285_v24, 30 }
  0xb8   :  { %v148_v20 = vor.u32 4788187, %v147_v16  ;;  %v151_v27 = vcvt.s32.f32 %v144_v56  ;;  %v287_v30 = vshll.u32 %v877_v29, 30 }
  0xba   :  { %v149_v44 = vand.u32 2147483647, %v148_v20  ;;  %v288_v33 = vsub.s32 %v284_v23, %v287_v30  ;;  %v310_v20 = vsub.s32 4, %v877_v29 }
  0xbc   :  { %v152_v28 = vmul.f32 %v151_v27, %v149_v44  ;;  %vm289_vm8 = vcmp.lt.s32.totalorder %v288_v33, 0  ;;  %v290_v38 = vsub.s32 0, %v288_v33  ;;  %v311_v24 = vsel %vm188_vm1, %v310_v20, %v877_v29 }
  0xbd   :  { %v313_v30 = vsel %vm187_vm2, 0, %v311_v24 }
  0xbe   :  { %v153_v41 = vxor.u32 2147483648, %v152_v28  ;;  %v291_v43 = vsel %vm289_vm8, %v290_v38, %v288_v33 }
  0xbf   :  { %v292_v45 = vclz %v291_v43 }
  0xc0   :  { %v154_v32 = vsel %vm33_vm6, %v153_v41, %v152_v28 }
  0xc1   :  { %v157_v35 = vsel %vm32_vm7, %v756_v5, %v154_v32  ;;  %v675_v49 = vadd.s32 4294967294, %v292_v45 }
  0xc2   :  { %v159_v36 = vmul.f32 %v157_v35, %v157_v35 }
  0xc3   :  { %vm676_vm9 = vcmp.lt.s32.totalorder %v675_v49, 0 }
  0xc4   :  { %v160_v22 = vmul.f32 -0.001358992, %v159_v36  ;;  %v167_v42 = vmul.f32 -0.00019511016, %v159_v36  ;;  %v295_v54 = vsel %vm676_vm9, 0, %v675_v49  ;;  %vm329_vm9 = vweird.f32 %v762_v14 }
  0xc5   :  { %v296_v59 = vsub.s32 32, %v295_v54  ;;  %v300_v31 = vsub.s32 4294967266, %v295_v54  ;;  %v297_v34 = vshll.u32 %v288_v33, %v295_v54 }
  0xc6   :  { %v161_v46 = vadd.f32 0.041655596, %v160_v22  ;;  %v168_v47 = vadd.f32 0.008332121, %v167_v42  ;;  %v641_v42 = vand.u32 3, %v313_v30 }
  0xc7   :  { %v298_v63 = vshrl.u32 %v280_v57, %v296_v59  ;;  %v301_v0 = vadd.s32 127, %v300_v31 }
  0xc8   :  { %v162_v6 = vmul.f32 %v161_v46, %v159_v36  ;;  %v169_v50 = vmul.f32 %v168_v47, %v159_v36  ;;  %vm642_vm3 = vcmp.lt.s32.totalorder %v641_v42, 2  ;;  %vm643_vm4 = vcmp.eq.s32.totalorder %v641_v42, 0 }
  0xc9   :  { %v299_v25 = vor.u32 %v298_v63, %v297_v34  ;;  %v302_v15 = vshll.u32 %v301_v0, 23  ;;  %vm646_vm8 = vcmp.eq.s32.totalorder %v641_v42, 2 }
  0xca   :  { %v163_v51 = vadd.f32 -0.4999988, %v162_v6  ;;  %v170_v52 = vadd.f32 -0.16666654, %v169_v50 }
  0xcb   :  { %v303_v4 = vor.u32 4788187, %v302_v15  ;;  %v306_v1 = vcvt.s32.f32 %v299_v25 }
  0xcc   :  { %v164_v60 = vmul.f32 %v163_v51, %v159_v36  ;;  %v171_v26 = vmul.f32 %v170_v52, %v159_v36  ;;  %v330_v36 = vadd.s32 3, %v313_v30 }
  0xcd   :  { %v304_v39 = vand.u32 2147483647, %v303_v4 }
  0xce   :  { %v165_v37 = vadd.f32 1.0, %v164_v60  ;;  %v172_v40 = vadd.f32 1.0, %v171_v26  ;;  %v331_v43 = vand.u32 3, %v330_v36 }
  0xcf   :  { %v307_v13 = vmul.f32 %v306_v1, %v304_v39 }
  0xd0   :  { %v173_v58 = vmul.f32 %v172_v40, %v157_v35  ;;  %v182_v3 = vxor.u32 2147483648, %v165_v37  ;;  %vm332_vm5 = vcmp.lt.s32.totalorder %v331_v43, 2  ;;  %vm333_vm6 = vcmp.eq.s32.totalorder %v331_v43, 0 }
  0xd1   :  { %v308_v18 = vxor.u32 2147483648, %v307_v13  ;;  %vm336_vm7 = vcmp.eq.s32.totalorder %v331_v43, 2 }
  0xd2   :  { %v179_v7 = vxor.u32 2147483648, %v173_v58  ;;  %v183_v9 = vsel %vm181_vm15, %v182_v3, %v173_v58  ;;  %v494_v11 = vsel %vm492_vm13, %v182_v3, %v173_v58 }
  0xd3   :  { %v309_v19 = vsel %vm188_vm1, %v308_v18, %v307_v13 }
  0xd4   :  { %v180_v8 = vsel %vm178_vm14, %v165_v37, %v179_v7  ;;  %v491_v10 = vsel %vm489_vm12, %v165_v37, %v179_v7  ;;  %v312_v23 = vsel %vm187_vm2, %v762_v14, %v309_v19 }
  0xd5   :  { %v184_v55 = vsel %vm177_vm11, %v180_v8, %v183_v9  ;;  %v495_v12 = vsel %vm488_vm10, %v491_v10, %v494_v11  ;;  %v314_v5 = vmul.f32 %v312_v23, %v312_v23 }
  0xd6   :  { %v185_v56 = vsel %vm174_vm0, nan, %v184_v55  ;;  %v496_v16 = vsel %vm174_vm0, nan, %v495_v12 }
  0xd7   :  { %341 = vst [vmem:[#allocation2 + $0x8] sm:$0xff] %v185_v56  ;;  %v315_v44 = vmul.f32 -0.001358992, %v314_v5  ;;  %v322_v27 = vmul.f32 -0.00019511016, %v314_v5 }
  0xd8   :  { %651 = vst [vmem:[#allocation2 + $0x18] sm:$0xff] %v496_v16 }
  0xd9   :  { %v316_v28 = vadd.f32 0.041655596, %v315_v44  ;;  %v323_v41 = vadd.f32 0.008332121, %v322_v27 }
  0xdb   :  { %v317_v32 = vmul.f32 %v316_v28, %v314_v5  ;;  %v324_v62 = vmul.f32 %v323_v41, %v314_v5 }
  0xdd   :  { %v318_v33 = vadd.f32 -0.4999988, %v317_v32  ;;  %v325_v35 = vadd.f32 -0.16666654, %v324_v62 }
  0xdf   :  { %v319_v38 = vmul.f32 %v318_v33, %v314_v5  ;;  %v326_v17 = vmul.f32 %v325_v35, %v314_v5 }
  0xe1   :  { %v320_v21 = vadd.f32 1.0, %v319_v38  ;;  %v327_v22 = vadd.f32 1.0, %v326_v17 }
  0xe3   :  { %v328_v45 = vmul.f32 %v327_v22, %v312_v23  ;;  %v337_v46 = vxor.u32 2147483648, %v320_v21 }
  0xe5   :  { %v334_v47 = vxor.u32 2147483648, %v328_v45  ;;  %v338_v48 = vsel %vm336_vm7, %v337_v46, %v328_v45  ;;  %v648_v6 = vsel %vm646_vm8, %v337_v46, %v328_v45 }
  0xe7   :  { %v335_v29 = vsel %vm333_vm6, %v320_v21, %v334_v47  ;;  %v645_v49 = vsel %vm643_vm4, %v320_v21, %v334_v47 }
  0xe8   :  { %v339_v50 = vsel %vm332_vm5, %v335_v29, %v338_v48  ;;  %v649_v51 = vsel %vm642_vm3, %v645_v49, %v648_v6 }
  0xe9   :  { %v340_v52 = vsel %vm329_vm9, nan, %v339_v50  ;;  %v650_v53 = vsel %vm329_vm9, nan, %v649_v51 }
  0xea   :  { %342 = vst [vmem:[#allocation2 + $0x10] sm:$0xff] %v340_v52 }
  0xeb   :  { %652 = vst [vmem:[#allocation2 + $0x20] sm:$0xff] %v650_v53 }
  0xec   :  { %665 = dma.vmem_to_hbm [thread:$0]  %s658_s1, 640, %s660_s17, [#allocation3], %s729_s18, %s729_s18, %s730_s2  }
  0xed   :  { %719 = dma.done.wait [#allocation3], 640  }
  0xee   :  { %720 = vsyncadd [#allocation3], 4294966656 }
  0xef   :  { %670 = vsyncpa [#allocation3], 1 }

</bundles_post_ra>
